<compile_context>
chip_gen: v7x
topology: tpu7x:2x2x1
jax: 0.10.0
libtpu: 0.0.40
codegen_flags: <defaults>
</compile_context>

<pallas_src>
import jax
import jax.numpy as jnp
from jax import lax
from jax.experimental import pallas as pl
from jax.experimental.pallas import tpu as pltpu

_N = 49           # number of softmax elements (torch.rand([49]))
_ROWS = 8         # full sublane tile
_LANES = 128      # full lane width


def _dummy_kernel(r_ref, o_ref):
    # r_ref / o_ref: (8, 128) f32 in VMEM.
    r = r_ref[...]

    row = lax.broadcasted_iota(jnp.int32, (_ROWS, _LANES), 0)
    lane = lax.broadcasted_iota(jnp.int32, (_ROWS, _LANES), 1)
    valid = jnp.logical_and(row == 0, lane < _N)

    # Softmax over the first _N lanes of row 0 only.  Inputs are uniform in
    # [0, 1): exp cannot overflow, so no max-subtraction is needed.  Invalid
    # positions contribute 0 to the sum.
    e = jnp.where(valid, jnp.exp(r), 0.0)
    s = jnp.sum(e)                      # scalar; only row 0 lanes < _N count
    p_full = e / s

    # Row 0 -> softmax p (padded with zeros); other rows pass the raw
    # uniforms through (row 1 lane 0 is v).  One unmasked full-tile store.
    o_ref[...] = jnp.where(row == 0, p_full, r)


def _dummy_pallas(r: jax.Array):
    return pl.pallas_call(
        _dummy_kernel,
        out_shape=jax.ShapeDtypeStruct((_ROWS, _LANES), jnp.float32),
        in_specs=[pl.BlockSpec(memory_space=pltpu.MemorySpace.VMEM)],
        out_specs=pl.BlockSpec(memory_space=pltpu.MemorySpace.VMEM),
    )(r)


@jax.jit
def dummy_forward(inputs: jax.Array, key: jax.Array):
    """Mirrors Dummy.forward: `inputs` is accepted but unused (as in PyTorch)."""
    del inputs  # unused by the reference module
    # Single uniform draw covers both the 49 softmax inputs and the scalar v.
    r = jax.random.uniform(key, (_ROWS, _LANES), dtype=jnp.float32)
    out = _dummy_pallas(r)
    p = out[0, :_N]    # (49,)
    v = out[1, :1]     # (1,)
    return p, v


if __name__ == "__main__":
    key = jax.random.PRNGKey(0)
    # Small example input consistent with a generic NCHW tensor (unused by forward).
    x_key, rng_key = jax.random.split(key)
    x = jax.random.normal(x_key, (2, 4, 16, 16), dtype=jnp.float32)

    p, v = dummy_forward(x, rng_key)
    jax.block_until_ready((p, v))

    # sanity checks
    assert p.shape == (_N,)
    assert v.shape == (1,)
    assert abs(float(jnp.sum(p)) - 1.0) < 1e-4
    assert bool(jnp.all(p > 0.0))
    assert 0.0 <= float(v[0]) < 1.0

    print("KERNEL_OK")
</pallas_src>

<mosaic_0001>
module attributes {stable_mosaic.version = 11 : i64} {
  func.func @_dummy_kernel(%arg0: memref<8x128xf32, #tpu.memory_space<vmem>>, %arg1: memref<8x128xf32, #tpu.memory_space<vmem>>) attributes {dimension_semantics = [], scalar_prefetch = 0 : i64, scratch_operands = 0 : i64, tpu.core_type = #tpu.core_type<tc>} {
    %c0 = arith.constant 0 : index
    %c0_0 = arith.constant 0 : index
    %0 = vector.load %arg0[%c0, %c0_0] : memref<8x128xf32, #tpu.memory_space<vmem>>, vector<8x128xf32>
    %1 = tpu.iota {dimensions = array<i32: 0>} : vector<8x128xi32>
    %2 = tpu.iota {dimensions = array<i32: 1>} : vector<8x128xi32>
    %c0_i32 = arith.constant 0 : i32
    %3 = vector.broadcast %c0_i32 : i32 to vector<8x128xi32>
    %4 = arith.cmpi eq, %1, %3 : vector<8x128xi32>
    %c49_i32 = arith.constant 49 : i32
    %5 = vector.broadcast %c49_i32 : i32 to vector<8x128xi32>
    %6 = arith.cmpi slt, %2, %5 : vector<8x128xi32>
    %7 = arith.andi %4, %6 : vector<8x128xi1>
    %8 = math.exp %0 : vector<8x128xf32>
    %cst = arith.constant 0.000000e+00 : f32
    %9 = vector.broadcast %cst : f32 to vector<8x128xf32>
    %10 = arith.select %7, %8, %9 : vector<8x128xi1>, vector<8x128xf32>
    %11 = vector.shape_cast %10 : vector<8x128xf32> to vector<1x8x128xf32>
    %cst_1 = arith.constant dense<0.000000e+00> : vector<1xf32>
    %12 = vector.multi_reduction <add>, %11, %cst_1 [1, 2] : vector<1x8x128xf32> to vector<1xf32>
    %13 = vector.shape_cast %12 : vector<1xf32> to vector<1x1x1xf32>
    %14 = vector.extract %13[0, 0, 0] : f32 from vector<1x1x1xf32>
    %15 = vector.broadcast %14 : f32 to vector<8x128xf32>
    %16 = arith.divf %10, %15 : vector<8x128xf32>
    %c0_i32_2 = arith.constant 0 : i32
    %17 = vector.broadcast %c0_i32_2 : i32 to vector<8x128xi32>
    %18 = arith.cmpi eq, %1, %17 : vector<8x128xi32>
    %19 = arith.select %18, %16, %0 : vector<8x128xi1>, vector<8x128xf32>
    %c0_3 = arith.constant 0 : index
    %c0_4 = arith.constant 0 : index
    %20 = vector.load %arg1[%c0_3, %c0_4] : memref<8x128xf32, #tpu.memory_space<vmem>>, vector<8x128xf32>
    tpu.vector_store %arg1[%c0_3, %c0_4], %19 {strides = array<i32>} : memref<8x128xf32, #tpu.memory_space<vmem>>, vector<8x128xf32>,
    return
  }
}

</mosaic_0001>

<bundles_post_ra>
// kernel: dummy_forward.1
= control target key start
LH: loop header
LB: loop body
LE: loop exit
PB: predicated region body
PF: predicated region fallthrough
CT: control target
= control target key end

     0   :  { %v9_v1 = vlaneseq  ;;  %s61_s0 = inlined_call_operand.vmem [shape: f32[8,128], index: 0, kind: input, shape index: {}]   ;;  %s62_s1 = inlined_call_operand.vmem [shape: f32[8,128], index: 1, kind: output, shape index: {}]  }
   0x1   :  { %v8_v0 = vld [vmem:[%s61_s0] sm:$0xff] }
   0x2   :  { %v16_v2 = vmul.f32 1.442695, %v8_v0  ;;  %v10_v3 = vshrl.u32 %v9_v1, 7  ;;  %v12_v4 = vand.u32 127, %v9_v1 }
   0x4   :  { %39 = vpow2.f32 %v16_v2  ;;  %vm13_vm0 = vcmp.eq.s32.totalorder %v10_v3, 0  ;;  %vm14_vm1 = vcmp.lt.s32.totalorder %v12_v4, 49 }
   0x5   :  { %vm15_vm2 = vmand %vm13_vm0, %vm14_vm1 }
   0xe   :  { %v40_v5 = vpop.eup %39 }
   0xf   :  { %v18_v6 = vsel %vm15_vm2, %v40_v5, 0.0 }
  0x10   :  { %19 = vadd.xlane.f32.xlu0 %v18_v6 }
  0x9d   :  { %v20_v7 = vpop.xlane.xlu0 %19 }
  0x9e   :  { %v21_v8 = vrot.slane %v20_v7, 4 }
  0xa0   :  { %v22_v9 = vadd.f32 %v21_v8, %v20_v7 }
  0xa2   :  { %v23_v10 = vrot.slane %v22_v9, 2 }
  0xa4   :  { %v24_v11 = vadd.f32 %v23_v10, %v22_v9 }
  0xa6   :  { %v25_v12 = vrot.slane %v24_v11, 1 }
  0xa8   :  { %v26_v13 = vadd.f32 %v25_v12, %v24_v11 }
  0xaa   :  { %37 = vpush %v26_v13 }
  0xdb   :  { %s38_s0 = spop %37 }
  0xdc   :  { %v28_v14 = vstv %s38_s0 }
  0xdd   :  { %41 = vrcp.f32 %v28_v14 }
  0xe7   :  { %v42_v15 = vpop.eup %41 }
  0xe8   :  { %v30_v16 = vmul.f32 %v42_v15, %v18_v6 }
  0xea   :  { %v31_v17 = vsel %vm13_vm0, %v30_v16, %v8_v0 }
  0xeb   :  { %32 = vst [vmem:[%s62_s1] sm:$0xff] %v31_v17 }

</bundles_post_ra>
